<compile_context>
chip_gen: v7x
topology: tpu7x:2x2x1
jax: 0.10.0
libtpu: 0.0.40
codegen_flags: <defaults>
</compile_context>

<pallas_src>
import functools

import jax
import jax.numpy as jnp
from jax import lax
from jax.experimental import pallas as pl
from jax.experimental.pallas import tpu as pltpu

_LANE = 128
_BN_EPS = 1e-5


def _round_up(n: int, m: int) -> int:
    return ((n + m - 1) // m) * m


# ---------------------------------------------------------------------------
# Fused Pallas kernel:
#   block one-hot features -> single fc1 matmul -> ELU -> BatchNorm1d -> fc2
# ---------------------------------------------------------------------------
def _make_kernel(emb_dims, num_numeric, hidden_p, classes_p):
    n_cat = len(emb_dims)
    cat_off, o = [], 0
    for n_i, _ in emb_dims:
        cat_off.append(o)
        o += n_i
    cat_width = o                      # total one-hot width
    feat_width = cat_width + num_numeric

    def kernel(x_ref, wfc1_ref, vec_ref, w2_ref, out_ref):
        x = x_ref[...]                                   # [B, n_cat + n_num] f32
        batch = x.shape[0]

        vecs = vec_ref[...]                              # [4, L]
        b1 = vecs[0:1, 0:hidden_p]
        gamma = vecs[1:2, 0:hidden_p]
        beta = vecs[2:3, 0:hidden_p]
        b2 = vecs[3:4, 0:classes_p]

        # ---- build the [B, F] feature tile (VPU only: iota/compare/select) ----
        col = lax.broadcasted_iota(jnp.int32, (batch, feat_width), 1)
        feat = jnp.zeros((batch, feat_width), jnp.float32)
        # categorical: block one-hot (out-of-range index -> all-zero block,
        # matching the previous kernel's silent-zero behaviour)
        for i, (n_i, _) in enumerate(emb_dims):
            idx = x[:, i:i + 1].astype(jnp.int32) + cat_off[i]       # [B, 1]
            hit = (col == idx) & (col >= cat_off[i]) & (col < cat_off[i] + n_i)
            feat = feat + jnp.where(hit, 1.0, 0.0)
        # numeric: pass-through into columns [cat_width, F)
        for j in range(num_numeric):
            feat = feat + jnp.where(col == cat_width + j,
                                    x[:, n_cat + j:n_cat + j + 1], 0.0)

        # ---- fc1: single MXU matmul against the fused weight ----
        h = jnp.dot(feat, wfc1_ref[...],
                    preferred_element_type=jnp.float32) + b1         # [B, Hp]

        # ---- ELU (alpha = 1.0) ----
        # TODO(synk): jnp.expm1 would match torch.nn.ELU bit-exactly; the clamped
        # exp form is kept for guaranteed Mosaic lowering (diff < 1e-7).
        h = jnp.where(h > 0, h, jnp.exp(jnp.minimum(h, 0.0)) - 1.0)

        # ---- BatchNorm1d, training-mode batch stats, one reduce pass ----
        mean = jnp.mean(h, axis=0, keepdims=True)        # [1, Hp]
        meansq = jnp.mean(h * h, axis=0, keepdims=True)  # [1, Hp]
        var = meansq - mean * mean
        scale = gamma * lax.rsqrt(var + _BN_EPS)
        shift = beta - mean * scale
        h = h * scale + shift                            # padded lanes stay exactly 0

        # ---- fc2 (non-inference path: raw logits, no softmax) ----
        out_ref[...] = (jnp.dot(h, w2_ref[...], preferred_element_type=jnp.float32)
                        + b2)

    return kernel


# ---------------------------------------------------------------------------
# Wrapper: single pallas_call over the whole (tiny) problem
# ---------------------------------------------------------------------------
@functools.partial(jax.jit,
                   static_argnames=("emb_dims", "num_numeric", "num_classes"))
def pet_classifier_forward(x, fused_params, *, emb_dims, num_numeric, num_classes):
    """x: [B, n_cat + n_num] float32 (categorical indices stored as floats).
    Returns logits [B, num_classes] float32."""
    x = x.astype(jnp.float32)
    B = x.shape[0]
    wfc1 = fused_params["wfc1"]        # [F, Hp]
    vecs = fused_params["vecs"]        # [4, L]
    w2 = fused_params["w2"]            # [Hp, Cp]
    F, Hp = wfc1.shape
    Cp = w2.shape[1]

    kernel = _make_kernel(emb_dims, num_numeric, Hp, Cp)
    vmem = pl.BlockSpec(memory_space=pltpu.MemorySpace.VMEM)

    cost = pl.CostEstimate(
        flops=int(2 * B * (F * Hp + Hp * Cp)),
        transcendentals=int(B * Hp),
        bytes_accessed=int(4 * (x.size + wfc1.size + vecs.size + w2.size + B * Cp)),
    )

    logits_padded = pl.pallas_call(
        kernel,
        out_shape=jax.ShapeDtypeStruct((B, Cp), jnp.float32),
        in_specs=[vmem, vmem, vmem, vmem],
        out_specs=vmem,
        cost_estimate=cost,
    )(x, wfc1, vecs, w2)
    return logits_padded[:, :num_classes]


# ---------------------------------------------------------------------------
# Parameter init (torch defaults)
# ---------------------------------------------------------------------------
def init_params(key, emb_dims, num_numeric, num_classes, hidden=10):
    no_of_embs = sum(d for _, d in emb_dims)
    in_feat = no_of_embs + num_numeric
    keys = jax.random.split(key, 4 + len(emb_dims))

    # nn.Embedding default: N(0, 1)
    emb_tables = [jax.random.normal(keys[i], (n, d), dtype=jnp.float32)
                  for i, (n, d) in enumerate(emb_dims)]

    # nn.Linear default: U(-1/sqrt(fan_in), 1/sqrt(fan_in))
    k1 = 1.0 / jnp.sqrt(jnp.float32(in_feat))
    w1 = jax.random.uniform(keys[-4], (in_feat, hidden), jnp.float32, -k1, k1)
    b1 = jax.random.uniform(keys[-3], (1, hidden), jnp.float32, -k1, k1)

    k2 = 1.0 / jnp.sqrt(jnp.float32(hidden))
    w2 = jax.random.uniform(keys[-2], (hidden, num_classes), jnp.float32, -k2, k2)
    b2 = jax.random.uniform(keys[-1], (1, num_classes), jnp.float32, -k2, k2)

    gamma = jnp.ones((1, hidden), jnp.float32)   # BatchNorm1d affine defaults
    beta = jnp.zeros((1, hidden), jnp.float32)

    return {"emb": emb_tables, "w1": w1, "b1": b1,
            "gamma": gamma, "beta": beta, "w2": w2, "b2": b2}


# ---------------------------------------------------------------------------
# One-time parameter fusion + lane padding to 128 (keep cached across calls)
#   wfc1 = concat([emb_0 @ W1_rows0, emb_1 @ W1_rows1, ..., W1_numeric]) [F, Hp]
#   vecs = [b1; gamma; beta; b2]                                         [4, L]
# Zero padding is exact: padded hidden lanes stay 0 through ELU/BN (gamma and
# beta padded with ZEROS, do not change) and padded output cols are sliced off.
# ---------------------------------------------------------------------------
def fuse_params(params, emb_dims, num_numeric, hidden, num_classes, lane=_LANE):
    Hp = _round_up(hidden, lane)
    Cp = _round_up(num_classes, lane)
    L = max(Hp, Cp)

    offs, o = [], 0
    for _, d in emb_dims:
        offs.append(o)
        o += d
    num_off = o                                        # start of numeric rows in W1

    w1 = params["w1"]                                  # [in_feat, hidden]
    blocks = []
    for i, (n_i, d_i) in enumerate(emb_dims):
        blocks.append(params["emb"][i] @ w1[offs[i]:offs[i] + d_i, :])   # [n_i, H]
    blocks.append(w1[num_off:num_off + num_numeric, :])                  # [n_num, H]
    wfc1 = jnp.concatenate(blocks, axis=0)             # [F, hidden]
    wfc1 = jnp.pad(wfc1, ((0, 0), (0, Hp - hidden)))   # [F, Hp]

    def row(v, width):
        v = v.reshape(1, -1)
        return jnp.pad(v, ((0, 0), (0, L - width)))

    vecs = jnp.concatenate([row(params["b1"], hidden),
                            row(params["gamma"], hidden),
                            row(params["beta"], hidden),
                            row(params["b2"], num_classes)], axis=0)     # [4, L]

    w2 = jnp.pad(params["w2"], ((0, Hp - hidden), (0, Cp - num_classes)))

    return {"wfc1": wfc1, "vecs": vecs, "w2": w2}


# ---------------------------------------------------------------------------
# Pure-JAX reference of the PyTorch forward (for a correctness check)
# ---------------------------------------------------------------------------
def pet_classifier_reference(x, params, emb_dims):
    n_cat = len(emb_dims)
    embs = [jnp.take(params["emb"][i], x[:, i].astype(jnp.int32), axis=0)
            for i in range(n_cat)]
    data = jnp.concatenate(embs + [x[:, n_cat:].astype(jnp.float32)], axis=1)
    h = data @ params["w1"] + params["b1"]
    h = jnp.where(h > 0, h, jnp.expm1(h))                      # nn.ELU
    mean = jnp.mean(h, axis=0, keepdims=True)
    var = jnp.mean((h - mean) ** 2, axis=0, keepdims=True)     # biased (training mode)
    h = (h - mean) * lax.rsqrt(var + _BN_EPS) * params["gamma"] + params["beta"]
    return h @ params["w2"] + params["b2"]


if __name__ == "__main__":
    # small config: 3 categorical features, 6 numeric features, 5 classes
    emb_dims = ((5, 3), (7, 4), (4, 2))        # sum of emb dims = 9
    num_numeric = 6
    num_classes = 5
    hidden = 10                                 # fixed by the module (fc1 -> 10)
    batch = 8

    key = jax.random.PRNGKey(0)
    k_param, k_cat, k_num = jax.random.split(key, 3)

    params = init_params(k_param, emb_dims, num_numeric, num_classes, hidden=hidden)
    fused_params = fuse_params(params, emb_dims, num_numeric,
                               hidden=hidden, num_classes=num_classes)

    # build input x: [B, n_cat + n_num], categorical indices stored as floats
    cat_cols = []
    cks = jax.random.split(k_cat, len(emb_dims))
    for i, (n, _) in enumerate(emb_dims):
        cat_cols.append(jax.random.randint(cks[i], (batch, 1), 0, n).astype(jnp.float32))
    num_cols = jax.random.normal(k_num, (batch, num_numeric), dtype=jnp.float32)
    x = jnp.concatenate(cat_cols + [num_cols], axis=1)          # [8, 9]

    out = pet_classifier_forward(x, fused_params, emb_dims=emb_dims,
                                 num_numeric=num_numeric, num_classes=num_classes)
    out = jax.block_until_ready(out)

    ref = pet_classifier_reference(x, params, emb_dims)
    assert out.shape == (batch, num_classes)
    assert jnp.all(jnp.isfinite(out))
    assert jnp.allclose(out, ref, rtol=1e-3, atol=5e-4), (out, ref)
    print("KERNEL_OK")
</pallas_src>

<mosaic_0001>
module attributes {stable_mosaic.version = 11 : i64} {
  func.func @kernel(%arg0: memref<8x9xf32, #tpu.memory_space<vmem>>, %arg1: memref<22x128xf32, #tpu.memory_space<vmem>>, %arg2: memref<4x128xf32, #tpu.memory_space<vmem>>, %arg3: memref<128x128xf32, #tpu.memory_space<vmem>>, %arg4: memref<8x128xf32, #tpu.memory_space<vmem>>) attributes {dimension_semantics = [], scalar_prefetch = 0 : i64, scratch_operands = 0 : i64, tpu.core_type = #tpu.core_type<tc>} {
    %c0 = arith.constant 0 : index
    %c0_0 = arith.constant 0 : index
    %0 = vector.load %arg0[%c0, %c0_0] : memref<8x9xf32, #tpu.memory_space<vmem>>, vector<8x9xf32>
    %c0_1 = arith.constant 0 : index
    %c0_2 = arith.constant 0 : index
    %1 = vector.load %arg2[%c0_1, %c0_2] : memref<4x128xf32, #tpu.memory_space<vmem>>, vector<4x128xf32>
    %2 = vector.extract_strided_slice %1 {offsets = [0, 0], sizes = [1, 128], strides = [1, 1]} : vector<4x128xf32> to vector<1x128xf32>
    %3 = vector.extract_strided_slice %1 {offsets = [1, 0], sizes = [1, 128], strides = [1, 1]} : vector<4x128xf32> to vector<1x128xf32>
    %4 = vector.extract_strided_slice %1 {offsets = [2, 0], sizes = [1, 128], strides = [1, 1]} : vector<4x128xf32> to vector<1x128xf32>
    %5 = vector.extract_strided_slice %1 {offsets = [3, 0], sizes = [1, 128], strides = [1, 1]} : vector<4x128xf32> to vector<1x128xf32>
    %6 = tpu.iota {dimensions = array<i32: 1>} : vector<8x22xi32>
    %cst = arith.constant 0.000000e+00 : f32
    %7 = vector.broadcast %cst : f32 to vector<8x22xf32>
    %8 = vector.extract_strided_slice %0 {offsets = [0, 0], sizes = [8, 1], strides = [1, 1]} : vector<8x9xf32> to vector<8x1xf32>
    %9 = arith.fptosi %8 : vector<8x1xf32> to vector<8x1xi32>
    %c0_i32 = arith.constant 0 : i32
    %10 = vector.broadcast %c0_i32 : i32 to vector<8x1xi32>
    %11 = arith.addi %9, %10 : vector<8x1xi32>
    %12 = vector.broadcast %11 : vector<8x1xi32> to vector<8x22xi32>
    %13 = arith.cmpi eq, %6, %12 : vector<8x22xi32>
    %c0_i32_3 = arith.constant 0 : i32
    %14 = vector.broadcast %c0_i32_3 : i32 to vector<8x22xi32>
    %15 = arith.cmpi sge, %6, %14 : vector<8x22xi32>
    %16 = arith.andi %13, %15 : vector<8x22xi1>
    %c5_i32 = arith.constant 5 : i32
    %17 = vector.broadcast %c5_i32 : i32 to vector<8x22xi32>
    %18 = arith.cmpi slt, %6, %17 : vector<8x22xi32>
    %19 = arith.andi %16, %18 : vector<8x22xi1>
    %cst_4 = arith.constant 1.000000e+00 : f32
    %cst_5 = arith.constant 0.000000e+00 : f32
    %20 = vector.broadcast %cst_4 : f32 to vector<8x22xf32>
    %21 = vector.broadcast %cst_5 : f32 to vector<8x22xf32>
    %22 = arith.select %19, %20, %21 : vector<8x22xi1>, vector<8x22xf32>
    %23 = arith.addf %7, %22 : vector<8x22xf32>
    %24 = vector.extract_strided_slice %0 {offsets = [0, 1], sizes = [8, 1], strides = [1, 1]} : vector<8x9xf32> to vector<8x1xf32>
    %25 = arith.fptosi %24 : vector<8x1xf32> to vector<8x1xi32>
    %c5_i32_6 = arith.constant 5 : i32
    %26 = vector.broadcast %c5_i32_6 : i32 to vector<8x1xi32>
    %27 = arith.addi %25, %26 : vector<8x1xi32>
    %28 = vector.broadcast %27 : vector<8x1xi32> to vector<8x22xi32>
    %29 = arith.cmpi eq, %6, %28 : vector<8x22xi32>
    %c5_i32_7 = arith.constant 5 : i32
    %30 = vector.broadcast %c5_i32_7 : i32 to vector<8x22xi32>
    %31 = arith.cmpi sge, %6, %30 : vector<8x22xi32>
    %32 = arith.andi %29, %31 : vector<8x22xi1>
    %c12_i32 = arith.constant 12 : i32
    %33 = vector.broadcast %c12_i32 : i32 to vector<8x22xi32>
    %34 = arith.cmpi slt, %6, %33 : vector<8x22xi32>
    %35 = arith.andi %32, %34 : vector<8x22xi1>
    %cst_8 = arith.constant 1.000000e+00 : f32
    %cst_9 = arith.constant 0.000000e+00 : f32
    %36 = vector.broadcast %cst_8 : f32 to vector<8x22xf32>
    %37 = vector.broadcast %cst_9 : f32 to vector<8x22xf32>
    %38 = arith.select %35, %36, %37 : vector<8x22xi1>, vector<8x22xf32>
    %39 = arith.addf %23, %38 : vector<8x22xf32>
    %40 = vector.extract_strided_slice %0 {offsets = [0, 2], sizes = [8, 1], strides = [1, 1]} : vector<8x9xf32> to vector<8x1xf32>
    %41 = arith.fptosi %40 : vector<8x1xf32> to vector<8x1xi32>
    %c12_i32_10 = arith.constant 12 : i32
    %42 = vector.broadcast %c12_i32_10 : i32 to vector<8x1xi32>
    %43 = arith.addi %41, %42 : vector<8x1xi32>
    %44 = vector.broadcast %43 : vector<8x1xi32> to vector<8x22xi32>
    %45 = arith.cmpi eq, %6, %44 : vector<8x22xi32>
    %c12_i32_11 = arith.constant 12 : i32
    %46 = vector.broadcast %c12_i32_11 : i32 to vector<8x22xi32>
    %47 = arith.cmpi sge, %6, %46 : vector<8x22xi32>
    %48 = arith.andi %45, %47 : vector<8x22xi1>
    %c16_i32 = arith.constant 16 : i32
    %49 = vector.broadcast %c16_i32 : i32 to vector<8x22xi32>
    %50 = arith.cmpi slt, %6, %49 : vector<8x22xi32>
    %51 = arith.andi %48, %50 : vector<8x22xi1>
    %cst_12 = arith.constant 1.000000e+00 : f32
    %cst_13 = arith.constant 0.000000e+00 : f32
    %52 = vector.broadcast %cst_12 : f32 to vector<8x22xf32>
    %53 = vector.broadcast %cst_13 : f32 to vector<8x22xf32>
    %54 = arith.select %51, %52, %53 : vector<8x22xi1>, vector<8x22xf32>
    %55 = arith.addf %39, %54 : vector<8x22xf32>
    %c16_i32_14 = arith.constant 16 : i32
    %56 = vector.broadcast %c16_i32_14 : i32 to vector<8x22xi32>
    %57 = arith.cmpi eq, %6, %56 : vector<8x22xi32>
    %58 = vector.extract_strided_slice %0 {offsets = [0, 3], sizes = [8, 1], strides = [1, 1]} : vector<8x9xf32> to vector<8x1xf32>
    %cst_15 = arith.constant 0.000000e+00 : f32
    %59 = vector.shape_cast %58 : vector<8x1xf32> to vector<8x1xf32>
    %60 = vector.broadcast %59 : vector<8x1xf32> to vector<8x22xf32>
    %61 = vector.broadcast %cst_15 : f32 to vector<8x22xf32>
    %62 = arith.select %57, %60, %61 : vector<8x22xi1>, vector<8x22xf32>
    %63 = arith.addf %55, %62 : vector<8x22xf32>
    %c17_i32 = arith.constant 17 : i32
    %64 = vector.broadcast %c17_i32 : i32 to vector<8x22xi32>
    %65 = arith.cmpi eq, %6, %64 : vector<8x22xi32>
    %66 = vector.extract_strided_slice %0 {offsets = [0, 4], sizes = [8, 1], strides = [1, 1]} : vector<8x9xf32> to vector<8x1xf32>
    %cst_16 = arith.constant 0.000000e+00 : f32
    %67 = vector.shape_cast %66 : vector<8x1xf32> to vector<8x1xf32>
    %68 = vector.broadcast %67 : vector<8x1xf32> to vector<8x22xf32>
    %69 = vector.broadcast %cst_16 : f32 to vector<8x22xf32>
    %70 = arith.select %65, %68, %69 : vector<8x22xi1>, vector<8x22xf32>
    %71 = arith.addf %63, %70 : vector<8x22xf32>
    %c18_i32 = arith.constant 18 : i32
    %72 = vector.broadcast %c18_i32 : i32 to vector<8x22xi32>
    %73 = arith.cmpi eq, %6, %72 : vector<8x22xi32>
    %74 = vector.extract_strided_slice %0 {offsets = [0, 5], sizes = [8, 1], strides = [1, 1]} : vector<8x9xf32> to vector<8x1xf32>
    %cst_17 = arith.constant 0.000000e+00 : f32
    %75 = vector.shape_cast %74 : vector<8x1xf32> to vector<8x1xf32>
    %76 = vector.broadcast %75 : vector<8x1xf32> to vector<8x22xf32>
    %77 = vector.broadcast %cst_17 : f32 to vector<8x22xf32>
    %78 = arith.select %73, %76, %77 : vector<8x22xi1>, vector<8x22xf32>
    %79 = arith.addf %71, %78 : vector<8x22xf32>
    %c19_i32 = arith.constant 19 : i32
    %80 = vector.broadcast %c19_i32 : i32 to vector<8x22xi32>
    %81 = arith.cmpi eq, %6, %80 : vector<8x22xi32>
    %82 = vector.extract_strided_slice %0 {offsets = [0, 6], sizes = [8, 1], strides = [1, 1]} : vector<8x9xf32> to vector<8x1xf32>
    %cst_18 = arith.constant 0.000000e+00 : f32
    %83 = vector.shape_cast %82 : vector<8x1xf32> to vector<8x1xf32>
    %84 = vector.broadcast %83 : vector<8x1xf32> to vector<8x22xf32>
    %85 = vector.broadcast %cst_18 : f32 to vector<8x22xf32>
    %86 = arith.select %81, %84, %85 : vector<8x22xi1>, vector<8x22xf32>
    %87 = arith.addf %79, %86 : vector<8x22xf32>
    %c20_i32 = arith.constant 20 : i32
    %88 = vector.broadcast %c20_i32 : i32 to vector<8x22xi32>
    %89 = arith.cmpi eq, %6, %88 : vector<8x22xi32>
    %90 = vector.extract_strided_slice %0 {offsets = [0, 7], sizes = [8, 1], strides = [1, 1]} : vector<8x9xf32> to vector<8x1xf32>
    %cst_19 = arith.constant 0.000000e+00 : f32
    %91 = vector.shape_cast %90 : vector<8x1xf32> to vector<8x1xf32>
    %92 = vector.broadcast %91 : vector<8x1xf32> to vector<8x22xf32>
    %93 = vector.broadcast %cst_19 : f32 to vector<8x22xf32>
    %94 = arith.select %89, %92, %93 : vector<8x22xi1>, vector<8x22xf32>
    %95 = arith.addf %87, %94 : vector<8x22xf32>
    %c21_i32 = arith.constant 21 : i32
    %96 = vector.broadcast %c21_i32 : i32 to vector<8x22xi32>
    %97 = arith.cmpi eq, %6, %96 : vector<8x22xi32>
    %98 = vector.extract_strided_slice %0 {offsets = [0, 8], sizes = [8, 1], strides = [1, 1]} : vector<8x9xf32> to vector<8x1xf32>
    %cst_20 = arith.constant 0.000000e+00 : f32
    %99 = vector.shape_cast %98 : vector<8x1xf32> to vector<8x1xf32>
    %100 = vector.broadcast %99 : vector<8x1xf32> to vector<8x22xf32>
    %101 = vector.broadcast %cst_20 : f32 to vector<8x22xf32>
    %102 = arith.select %97, %100, %101 : vector<8x22xi1>, vector<8x22xf32>
    %103 = arith.addf %95, %102 : vector<8x22xf32>
    %c0_21 = arith.constant 0 : index
    %c0_22 = arith.constant 0 : index
    %104 = vector.load %arg1[%c0_21, %c0_22] : memref<22x128xf32, #tpu.memory_space<vmem>>, vector<22x128xf32>
    %cst_23 = arith.constant dense<0.000000e+00> : vector<8x128xf32>
    %105 = tpu.matmul %103, %104, %cst_23 {dimension_numbers = #tpu.dot_dimension_numbers<[1], [0], [0], [1], [0, 0, 1, 1], [], []>} : vector<8x22xf32>, vector<22x128xf32>, vector<8x128xf32> -> vector<8x128xf32>
    %106 = vector.broadcast %2 : vector<1x128xf32> to vector<8x128xf32>
    %107 = arith.addf %105, %106 : vector<8x128xf32>
    %cst_24 = arith.constant 0.000000e+00 : f32
    %108 = vector.broadcast %cst_24 : f32 to vector<8x128xf32>
    %109 = arith.cmpf ogt, %107, %108 : vector<8x128xf32>
    %cst_25 = arith.constant 0.000000e+00 : f32
    %110 = vector.broadcast %cst_25 : f32 to vector<8x128xf32>
    %111 = arith.minimumf %107, %110 : vector<8x128xf32>
    %112 = math.exp %111 : vector<8x128xf32>
    %cst_26 = arith.constant 1.000000e+00 : f32
    %113 = vector.broadcast %cst_26 : f32 to vector<8x128xf32>
    %114 = arith.subf %112, %113 : vector<8x128xf32>
    %115 = arith.select %109, %107, %114 : vector<8x128xi1>, vector<8x128xf32>
    %cst_27 = arith.constant dense<0.000000e+00> : vector<128xf32>
    %116 = vector.multi_reduction <add>, %115, %cst_27 [0] : vector<8x128xf32> to vector<128xf32>
    %117 = vector.shape_cast %116 : vector<128xf32> to vector<1x128xf32>
    %cst_28 = arith.constant 8.000000e+00 : f32
    %118 = vector.broadcast %cst_28 : f32 to vector<1x128xf32>
    %119 = arith.divf %117, %118 : vector<1x128xf32>
    %120 = arith.mulf %115, %115 : vector<8x128xf32>
    %cst_29 = arith.constant dense<0.000000e+00> : vector<128xf32>
    %121 = vector.multi_reduction <add>, %120, %cst_29 [0] : vector<8x128xf32> to vector<128xf32>
    %122 = vector.shape_cast %121 : vector<128xf32> to vector<1x128xf32>
    %cst_30 = arith.constant 8.000000e+00 : f32
    %123 = vector.broadcast %cst_30 : f32 to vector<1x128xf32>
    %124 = arith.divf %122, %123 : vector<1x128xf32>
    %125 = arith.mulf %119, %119 : vector<1x128xf32>
    %126 = arith.subf %124, %125 : vector<1x128xf32>
    %cst_31 = arith.constant 9.99999974E-6 : f32
    %127 = vector.broadcast %cst_31 : f32 to vector<1x128xf32>
    %128 = arith.addf %126, %127 : vector<1x128xf32>
    %129 = math.rsqrt %128 : vector<1x128xf32>
    %130 = arith.mulf %3, %129 : vector<1x128xf32>
    %131 = arith.mulf %119, %130 : vector<1x128xf32>
    %132 = arith.subf %4, %131 : vector<1x128xf32>
    %133 = vector.broadcast %130 : vector<1x128xf32> to vector<8x128xf32>
    %134 = arith.mulf %115, %133 : vector<8x128xf32>
    %135 = vector.broadcast %132 : vector<1x128xf32> to vector<8x128xf32>
    %136 = arith.addf %134, %135 : vector<8x128xf32>
    %c0_32 = arith.constant 0 : index
    %c0_33 = arith.constant 0 : index
    %137 = vector.load %arg3[%c0_32, %c0_33] : memref<128x128xf32, #tpu.memory_space<vmem>>, vector<128x128xf32>
    %cst_34 = arith.constant dense<0.000000e+00> : vector<8x128xf32>
    %138 = tpu.matmul %136, %137, %cst_34 {dimension_numbers = #tpu.dot_dimension_numbers<[1], [0], [0], [1], [0, 0, 1, 1], [], []>} : vector<8x128xf32>, vector<128x128xf32>, vector<8x128xf32> -> vector<8x128xf32>
    %139 = vector.broadcast %5 : vector<1x128xf32> to vector<8x128xf32>
    %140 = arith.addf %138, %139 : vector<8x128xf32>
    %c0_35 = arith.constant 0 : index
    %c0_36 = arith.constant 0 : index
    %141 = vector.load %arg4[%c0_35, %c0_36] : memref<8x128xf32, #tpu.memory_space<vmem>>, vector<8x128xf32>
    tpu.vector_store %arg4[%c0_35, %c0_36], %140 {strides = array<i32>} : memref<8x128xf32, #tpu.memory_space<vmem>>, vector<8x128xf32>,
    return
  }
}

</mosaic_0001>

<bundles_post_ra>
// kernel: pet_classifier_forward.1
= control target key start
LH: loop header
LB: loop body
LE: loop exit
PB: predicated region body
PF: predicated region fallthrough
CT: control target
= control target key end

     0   :  { %9 = vsyncpa [#allocation3], 0  ;;  %s752_s0 = inlined_call_operand.hbm [shape: f32[8,9], index: 0, kind: input, shape index: {}]   ;;  %s753_s1 = inlined_call_operand.hbm [shape: f32[22,128], index: 1, kind: input, shape index: {}]   ;;  %s754_s2 = inlined_call_operand.hbm [shape: f32[4,128], index: 2, kind: input, shape index: {}]   ;;  %s755_s3 = inlined_call_operand.hbm [shape: f32[128,128], index: 3, kind: input, shape index: {}]   ;;  %s756_s4 = inlined_call_operand.hbm [shape: f32[8,128], index: 4, kind: output, shape index: {}]  }
   0x1   :  { %10 = vsyncpa [#allocation6], 0 }
   0x2   :  { %11 = vsyncpa [#allocation9], 0 }
   0x3   :  { %12 = vsyncpa [#allocation4], 0  ;;  %s631_s15 = smov [#allocation5]   ;;  %s513_s19 = scalar_lea.hbm %s753_s1, 384 }
   0x4   :  { %s28_s16 = sshll.u32 %s631_s15, 4  ;;  %p514_p0 = scmp.ne.s32.totalorder %s753_s1, %s513_s19  ;;  %s29_s16 = int_to_ptr.vmem [resolvable:$true] %s28_s16 }
   0x5   :  { %p517_p1 = scmp.lt.u32.totalorder %s513_s19, %s753_s1 }
   0x7   :  { %p519_p2 = pnand %p517_p1, %p514_p0 }
   0x9   :  { %522 = shalt.err (!%p519_p2)
}
   0xa   :  { %s523_s24 = scalar_lea.vmem %s29_s16, 384  ;;  %p528_p4 = scmp.lt.s32.totalorder %s29_s16, %s29_s16 }
   0xb   :  { %p524_p3 = scmp.ne.s32.totalorder %s29_s16, %s523_s24  ;;  %p529_p5 = scmp.lt.s32.totalorder %s523_s24, %s523_s24 }
   0xd   :  { %p530_p6 = por %p529_p5, %p528_p4 }
   0xf   :  { %p531_p7 = pnand %p530_p6, %p524_p3 }
  0x11   :  { %534 = shalt.err (!%p531_p7)
}
  0x12   :  { %s632_s25 = smov 128   ;;  %s633_s26 = smov 8  }
  0x13   :  { %34 = dma.hbm_to_vmem [thread:$0]  %s753_s1, 384, %s29_s16, [#allocation6], %s632_s25, %s632_s25, %s633_s26  }
  0x14   :  { %s634_s29 = smov [#allocation2]   ;;  %s635_s5 = smov [#allocation7]  }
  0x15   :  { %s19_s30 = sshll.u32 %s634_s29, 4  ;;  %s41_s6 = sshll.u32 %s635_s5, 4  ;;  %s20_s30 = int_to_ptr.vmem [resolvable:$true] %s19_s30  ;;  %s42_s6 = int_to_ptr.vmem [resolvable:$true] %s41_s6 }
  0x16   :  { %s535_s9 = scalar_lea.hbm %s752_s0, 128 }
  0x17   :  { %p536_p8 = scmp.ne.s32.totalorder %s752_s0, %s535_s9  ;;  %p539_p9 = scmp.lt.u32.totalorder %s535_s9, %s752_s0 }
  0x19   :  { %p541_p10 = pnand %p539_p9, %p536_p8 }
  0x1b   :  { %544 = shalt.err (!%p541_p10)
}
  0x1c   :  { %s545_s1 = scalar_lea.vmem %s20_s30, 128  ;;  %p550_p12 = scmp.lt.s32.totalorder %s20_s30, %s20_s30 }
  0x1d   :  { %p546_p11 = scmp.ne.s32.totalorder %s20_s30, %s545_s1  ;;  %p551_p13 = scmp.lt.s32.totalorder %s545_s1, %s545_s1 }
  0x1f   :  { %p552_p0 = por %p551_p13, %p550_p12 }
  0x21   :  { %p553_p1 = pnand %p552_p0, %p546_p11 }
  0x23   :  { %556 = shalt.err (!%p553_p1)
}
  0x24   :  { %22 = dma.hbm_to_vmem [thread:$0]  %s752_s0, 128, %s20_s30, [#allocation3]  }
  0x25   :  { %s557_s18 = scalar_lea.hbm %s754_s2, 64 }
  0x26   :  { %p558_p2 = scmp.ne.s32.totalorder %s754_s2, %s557_s18  ;;  %p561_p3 = scmp.lt.u32.totalorder %s557_s18, %s754_s2 }
  0x28   :  { %p563_p4 = pnand %p561_p3, %p558_p2 }
  0x2a   :  { %566 = shalt.err (!%p563_p4)
}
  0x2b   :  { %s567_s23 = scalar_lea.vmem %s42_s6, 64  ;;  %p572_p6 = scmp.lt.s32.totalorder %s42_s6, %s42_s6 }
  0x2c   :  { %p568_p5 = scmp.ne.s32.totalorder %s42_s6, %s567_s23  ;;  %p573_p7 = scmp.lt.s32.totalorder %s567_s23, %s567_s23 }
  0x2e   :  { %p574_p8 = por %p573_p7, %p572_p6 }
  0x30   :  { %p575_p9 = pnand %p574_p8, %p568_p5 }
  0x32   :  { %578 = shalt.err (!%p575_p9)
}
  0x33   :  { %44 = dma.hbm_to_vmem [thread:$0]  %s754_s2, 64, %s42_s6, [#allocation6]  }
  0x34   :  { %s636_s27 = smov [#allocation8]   ;;  %s579_s5 = scalar_lea.hbm %s755_s3, 2048 }
  0x35   :  { %s50_s28 = sshll.u32 %s636_s27, 4  ;;  %p580_p10 = scmp.ne.s32.totalorder %s755_s3, %s579_s5  ;;  %s51_s28 = int_to_ptr.vmem [resolvable:$true] %s50_s28 }
  0x36   :  { %p583_p11 = scmp.lt.u32.totalorder %s579_s5, %s755_s3 }
  0x38   :  { %p585_p12 = pnand %p583_p11, %p580_p10 }
  0x3a   :  { %588 = shalt.err (!%p585_p12)
}
  0x3b   :  { %s589_s11 = scalar_lea.vmem %s51_s28, 2048  ;;  %p594_p0 = scmp.lt.s32.totalorder %s51_s28, %s51_s28 }
  0x3c   :  { %p590_p13 = scmp.ne.s32.totalorder %s51_s28, %s589_s11  ;;  %p595_p1 = scmp.lt.s32.totalorder %s589_s11, %s589_s11 }
  0x3e   :  { %p596_p2 = por %p595_p1, %p594_p0 }
  0x40   :  { %p597_p3 = pnand %p596_p2, %p590_p13 }
  0x42   :  { %600 = shalt.err (!%p597_p3)
}
  0x43   :  { %56 = dma.hbm_to_vmem [thread:$0]  %s755_s3, 2048, %s51_s28, [#allocation9], %s632_s25, %s632_s25, %s633_s26  }
  0x44   :  { %623 = dma.done.wait [#allocation3], 128  }
  0x45   :  { %624 = vsyncadd [#allocation3], 4294967168 }
  0x46   :  { %625 = dma.done.wait [#allocation6], 448  }
  0x47   :  { %626 = vsyncadd [#allocation6], 4294966848 }
  0x48   :  { %627 = dma.done.wait [#allocation9], 2048  }
  0x49   :  { %628 = vsyncadd [#allocation9], 4294965248  ;;  %v637_v0 = vmov 2   ;;  %v638_v1 = vmov 1   ;;  %v69_v2 = vld [vmem:[#allocation2] sm:$0xff]  ;;  %v639_v7 = vmov 3   ;;  %v71_v20 = vlaneseq }
  0x4a   :  { %502 = vset.pattern.permute.xlu1 %v637_v0  ;;  %500 = vset.pattern.permute.xlu0 %v638_v1  ;;  %v479_v3 = vtrunc.f32 %v69_v2  ;;  %v640_v8 = vmov 0   ;;  %v641_v9 = vmov 4   ;;  %v642_v10 = vmov 5   ;;  %v149_v14 = vld [vmem:[#allocation5] sm:$0xff]  ;;  %v150_v15 = vld [vmem:[#allocation5 + $0x8] sm:$0xff]  ;;  %v279_v52 = vld [vmem:[#allocation8 + $0x18] sm:$0xff] }
  0x4b   :  { %v643_v11 = vmov 6   ;;  %v644_v12 = vmov 8   ;;  %v645_v13 = vmov 0.0|0.0   ;;  %v646_v16 = vmov 7   ;;  %v151_v19 = vld [vmem:[#allocation5 + $0x10] sm:$0x3f] }
  0x4c   :  { %v480_v4 = vcvt.f32.s32 %v479_v3  ;;  %452 = vmatprep.subr.bf16.mxu0 %v645_v13  ;;  %455 = vmatprep.subr.bf16.mxu1 %v645_v13  ;;  %v453_v17 = vpack.c.bf16 %v150_v15, %v149_v14  ;;  %v647_v18 = vmov 0.0   ;;  %vm160_vm0 = vcmask 1045504   ;;  %v276_v48 = vld [vmem:[#allocation8] sm:$0xff]  ;;  %v277_v49 = vld [vmem:[#allocation8 + $0x8] sm:$0xff]  ;;  %v278_v51 = vld [vmem:[#allocation8 + $0x10] sm:$0xff]  ;;  %s649_s3 = smov [#allocation10]  }
  0x4d   :  { %vm648_vm1 = vmmov 0   ;;  %v72_v21 = vand.u32 127, %v71_v20  ;;  %v456_v50 = vpack.c.bf16 %v277_v49, %v276_v48  ;;  %v280_v53 = vld [vmem:[#allocation8 + $0x20] sm:$0xff]  ;;  %v459_v54 = vpack.c.bf16 %v279_v52, %v278_v51  ;;  %v281_v55 = vld [vmem:[#allocation8 + $0x28] sm:$0xff]  ;;  %v282_v57 = vld [vmem:[#allocation8 + $0x30] sm:$0xff]  ;;  %s373_s25 = sshll.u32 %s649_s3, 4  ;;  %s374_s25 = int_to_ptr.vmem [resolvable:$true] %s373_s25 }
  0x4e   :  { %v95_v5 = vadd.s32 12, %v480_v4  ;;  %v84_v6 = vadd.s32 5, %v480_v4  ;;  %454 = vmatpush3.bf16.msra.mxu0 %v453_v17  ;;  %414 = vmatprep.mubr.msk.f32.mxu0 %vm648_vm1, %v647_v18  ;;  %v462_v56 = vpack.c.bf16 %v281_v55, %v280_v53  ;;  %v283_v58 = vld [vmem:[#allocation8 + $0x38] sm:$0xff]  ;;  %v284_v60 = vld [vmem:[#allocation8 + $0x40] sm:$0xff]  ;;  %v285_v61 = vld [vmem:[#allocation8 + $0x48] sm:$0xff]  ;;  %s601_s26 = scalar_lea.vmem %s374_s25, 128  ;;  %p606_p5 = scmp.lt.s32.totalorder %s374_s25, %s374_s25 }
  0x4f   :  { %412 = vmatprep.subr.mxu0 %v647_v18  ;;  %449 = vmatprep.mubr.msk.f32.mxu1 %vm648_vm1, %v647_v18  ;;  %vm100_vm2 = vcmp.ge.s32.totalorder %v72_v21, 12  ;;  %vm89_vm4 = vcmp.ge.s32.totalorder %v72_v21, 5  ;;  %vm91_vm6 = vcmp.lt.s32.totalorder %v72_v21, 12  ;;  %vm102_vm7 = vcmp.lt.s32.totalorder %v72_v21, 16  ;;  %v286_v63 = vld [vmem:[#allocation8 + $0x50] sm:$0xff]  ;;  %v287_v0 = vld [vmem:[#allocation8 + $0x58] sm:$0xff]  ;;  %p602_p4 = scmp.ne.s32.totalorder %s374_s25, %s601_s26  ;;  %p607_p6 = scmp.lt.s32.totalorder %s601_s26, %s601_s26 }
  0x50   :  { %97 = vperm.xlu1 %502, %v95_v5   ;;  %86 = vperm.xlu0 %500, %v84_v6   ;;  %vm80_vm10 = vcmp.lt.s32.totalorder %v72_v21, 5  ;;  %vm106_vm15 = vcmp.eq.s32.totalorder %v72_v21, 16  ;;  %vm121_vm1 = vcmp.eq.s32.totalorder %v72_v21, 18  ;;  %v465_v59 = vpack.c.bf16 %v283_v58, %v282_v57  ;;  %v289_v3 = vld [vmem:[#allocation8 + $0x68] sm:$0xff]  ;;  %v290_v5 = vld [vmem:[#allocation8 + $0x70] sm:$0xff]  ;;  %v291_v6 = vld [vmem:[#allocation8 + $0x78] sm:$0xff] }
  0x51   :  { %457 = vmatpush3.bf16.msra.mxu1 %v456_v50  ;;  %v468_v62 = vpack.c.bf16 %v285_v61, %v284_v60  ;;  %v471_v1 = vpack.c.bf16 %v287_v0, %v286_v63  ;;  %p608_p7 = por %p607_p6, %p606_p5 }
  0x52   :  { %413 = vmatpush3.msk.msra.mxu0 %vm160_vm0, %v151_v19  ;;  %vm114_vm0 = vcmp.eq.s32.totalorder %v72_v21, 17  ;;  %458 = vmatprep.subr.bf16.mxu1 %v645_v13 }
  0x53   :  { %p609_p8 = pnand %p608_p7, %p602_p4 }
  0x54   :  { %503 = vset.pattern.permute.xlu1 %v639_v7  ;;  %501 = vset.pattern.permute.xlu0 %v640_v8  ;;  %v477_v7 = vpack.c.bf16 %v291_v6, %v290_v5  ;;  %v153_v8 = vshrl.u32 %v71_v20, 7 }
  0x55   :  { %109 = vperm.xlu1 %503, %v69_v2   ;;  %75 = vperm.xlu0 %501, %v480_v4  }
  0x56   :  { %460 = vmatpush3.bf16.msra.mxu1 %v459_v54  ;;  %v294_v49 = vsub.s32 3, %v153_v8 }
  0x57   :  { %461 = vmatprep.subr.bf16.mxu1 %v645_v13 }
  0x59   :  { %504 = vset.pattern.permute.xlu1 %v641_v9  ;;  %505 = vset.pattern.permute.xlu0 %v642_v10  ;;  %v154_v9 = vsub.s32 0, %v153_v8  ;;  %v70_v10 = vld [vmem:[#allocation7] sm:$0xf] }
  0x5a   :  { %116 = vperm.xlu1 %504, %v69_v2   ;;  %123 = vperm.xlu0 %505, %v69_v2   ;;  %v295_v50 = vrot.slane %v70_v10, %v294_v49 }
  0x5b   :  { %463 = vmatpush3.bf16.msra.mxu1 %v462_v56 }
  0x5c   :  { %464 = vmatprep.subr.bf16.mxu1 %v645_v13 }
  0x5e   :  { %506 = vset.pattern.permute.xlu1 %v643_v11  ;;  %508 = vset.pattern.permute.xlu0 %v644_v12  ;;  %v155_v11 = vrot.slane %v70_v10, %v154_v9 }
  0x5f   :  { %130 = vperm.xlu1 %506, %v69_v2   ;;  %144 = vperm.xlu0 %508, %v69_v2  }
  0x60   :  { %466 = vmatpush3.bf16.msra.mxu1 %v465_v59 }
  0x61   :  { %467 = vmatprep.subr.bf16.mxu1 %v645_v13 }
  0x63   :  { %507 = vset.pattern.permute.xlu1 %v646_v16 }
  0x64   :  { %137 = vperm.xlu1 %507, %v69_v2   ;;  %469 = vmatpush3.bf16.msra.mxu1 %v468_v62  ;;  %v288_v2 = vld [vmem:[#allocation8 + $0x60] sm:$0xff] }
  0x65   :  { %470 = vmatprep.subr.bf16.mxu1 %v645_v13  ;;  %v474_v4 = vpack.c.bf16 %v289_v3, %v288_v2 }
  0x68   :  { %472 = vmatpush3.bf16.msra.mxu1 %v471_v1 }
  0x69   :  { %473 = vmatprep.subr.bf16.mxu1 %v645_v13 }
  0x6c   :  { %475 = vmatpush3.bf16.msra.mxu1 %v474_v4 }
  0x6d   :  { %476 = vmatprep.subr.bf16.mxu1 %v645_v13 }
  0x70   :  { %478 = vmatpush3.bf16.msra.mxu1 %v477_v7 }
  0xcf   :  { %v98_v22 = vpop.permute.xlu1 %97  ;;  %v87_v23 = vpop.permute.xlu0 %86 }
  0xd0   :  { %vm99_vm3 = vcmp.eq.s32.totalorder %v72_v21, %v98_v22  ;;  %vm88_vm5 = vcmp.eq.s32.totalorder %v72_v21, %v87_v23 }
  0xd1   :  { %vm101_vm8 = vmand %vm99_vm3, %vm100_vm2  ;;  %vm128_vm2 = vcmp.eq.s32.totalorder %v72_v21, 19  ;;  %vm135_vm3 = vcmp.eq.s32.totalorder %v72_v21, 20 }
  0xd2   :  { %vm90_vm9 = vmand %vm88_vm5, %vm89_vm4  ;;  %vm142_vm4 = vcmp.eq.s32.totalorder %v72_v21, 21  ;;  %vm156_vm5 = vcmask 179200  }
  0xd3   :  { %vm92_vm11 = vmand %vm90_vm9, %vm91_vm6 }
  0xd4   :  { %v110_v24 = vpop.permute.xlu1 %109  ;;  %v76_v25 = vpop.permute.xlu0 %75  ;;  %vm103_vm12 = vmand %vm101_vm8, %vm102_vm7  ;;  %v93_v26 = vsel %vm92_vm11, 1.0, %v647_v18 }
  0xd5   :  { %vm77_vm13 = vcmp.eq.s32.totalorder %v72_v21, %v76_v25  ;;  %v104_v29 = vsel %vm103_vm12, 1.0, %v647_v18  ;;  %v112_v33 = vsel %vm106_vm15, %v110_v24, 0.0 }
  0xd6   :  { %vm81_vm14 = vmand %vm77_vm13, %vm80_vm10 }
  0xd7   :  { %v82_v27 = vsel %vm81_vm14, 1.0, %v647_v18 }
  0xd8   :  { %v94_v28 = vadd.f32 %v93_v26, %v82_v27 }
  0xd9   :  { %v117_v30 = vpop.permute.xlu1 %116  ;;  %v124_v32 = vpop.permute.xlu0 %123 }
  0xda   :  { %v105_v31 = vadd.f32 %v104_v29, %v94_v28  ;;  %v119_v35 = vsel %vm114_vm0, %v117_v30, 0.0  ;;  %v126_v36 = vsel %vm121_vm1, %v124_v32, 0.0 }
  0xdc   :  { %v113_v34 = vadd.f32 %v112_v33, %v105_v31 }
  0xde   :  { %v120_v37 = vadd.f32 %v119_v35, %v113_v34  ;;  %v131_v38 = vpop.permute.xlu1 %130  ;;  %v145_v41 = vpop.permute.xlu0 %144 }
  0xdf   :  { %v133_v40 = vsel %vm128_vm2, %v131_v38, 0.0  ;;  %v147_v45 = vsel %vm142_vm4, %v145_v41, 0.0 }
  0xe0   :  { %v127_v39 = vadd.f32 %v126_v36, %v120_v37 }
  0xe2   :  { %v134_v42 = vadd.f32 %v133_v40, %v127_v39  ;;  %v268_v40 = vsub.s32 1, %v153_v8 }
  0xe3   :  { %v138_v43 = vpop.permute.xlu1 %137 }
  0xe4   :  { %v140_v44 = vsel %vm135_vm3, %v138_v43, 0.0 }
  0xe5   :  { %v141_v46 = vadd.f32 %v140_v44, %v134_v42  ;;  %v273_v44 = vsub.s32 2, %v153_v8 }
  0xe7   :  { %v148_v47 = vadd.f32 %v147_v45, %v141_v46 }
  0xe9   :  { %415 = vmatmul.mubr.msk.f32.vlgmr.msra.gmra.mrb[0].mxu0 %vm156_vm5, %v148_v47 }
 0x1bc   :  { %v230_v12 = vpop.f32.mrb[0].mxu0 }
 0x1bd   :  { %v231_v14 = vadd.f32 %v230_v12, %v155_v11  ;;  %v416_v15 = vpop.f32.mrb[1].mxu0 }
 0x1bf   :  { %v235_v16 = vmin.f32 %v231_v14, 0.0  ;;  %vm234_vm6 = vcmp.gt.f32.partialorder %v231_v14, 0.0 }
 0x1c1   :  { %v236_v17 = vmul.f32 1.442695, %v235_v16 }
 0x1c3   :  { %509 = vpow2.f32 %v236_v17 }
 0x1cd   :  { %v510_v18 = vpop.eup %509 }
 0x1ce   :  { %v386_v19 = vadd.f32 -1.0, %v510_v18 }
 0x1d0   :  { %v239_v21 = vsel %vm234_vm6, %v231_v14, %v386_v19 }
 0x1d1   :  { %v240_v22 = vrot.slane %v239_v21, 4  ;;  %v248_v23 = vmul.f32 %v239_v21, %v239_v21 }
 0x1d3   :  { %v241_v24 = vadd.f32 %v240_v22, %v239_v21  ;;  %v249_v13 = vrot.slane %v248_v23, 4 }
 0x1d5   :  { %v242_v25 = vrot.slane %v241_v24, 2  ;;  %v250_v26 = vadd.f32 %v249_v13, %v248_v23 }
 0x1d7   :  { %v243_v20 = vadd.f32 %v242_v25, %v241_v24  ;;  %v251_v27 = vrot.slane %v250_v26, 2 }
 0x1d9   :  { %v244_v28 = vrot.slane %v243_v20, 1  ;;  %v252_v29 = vadd.f32 %v251_v27, %v250_v26 }
 0x1db   :  { %v253_v30 = vrot.slane %v252_v29, 1  ;;  %v245_v31 = vadd.f32 %v244_v28, %v243_v20 }
 0x1dd   :  { %v254_v32 = vadd.f32 %v253_v30, %v252_v29  ;;  %v247_v33 = vmul.f32 0.125, %v245_v31 }
 0x1df   :  { %v255_v34 = vmul.f32 0.125, %v254_v32  ;;  %v256_v35 = vmul.f32 %v247_v33, %v247_v33 }
 0x1e1   :  { %v257_v36 = vsub.f32 %v255_v34, %v256_v35 }
 0x1e3   :  { %v258_v37 = vadd.f32 1e-05, %v257_v36 }
 0x1e5   :  { %511 = vrsqrt.f32 %v258_v37 }
 0x1ef   :  { %v512_v38 = vpop.eup %511 }
 0x1f0   :  { %v260_v39 = vmul.f32 %v512_v38, %v70_v10 }
 0x1f2   :  { %v261_v41 = vmul.f32 %v260_v39, %v247_v33  ;;  %v269_v43 = vrot.slane %v260_v39, %v268_v40 }
 0x1f4   :  { %v263_v42 = vrot.slane %v261_v41, 7  ;;  %v270_v46 = vmul.f32 %v269_v43, %v239_v21 }
 0x1f6   :  { %v265_v45 = vsub.f32 %v70_v10, %v263_v42 }
 0x1f8   :  { %v274_v47 = vrot.slane %v265_v45, %v273_v44 }
 0x1fa   :  { %v275_v48 = vadd.f32 %v274_v47, %v270_v46 }
 0x1fc   :  { %450 = vmatmul.mubr.f32.vlgmr.msra.gmra.mrb[0].mxu1 %v275_v48 }
 0x2cf   :  { %v362_v51 = vpop.f32.mrb[0].mxu1 }
 0x2d0   :  { %v363_v52 = vadd.f32 %v362_v51, %v295_v50  ;;  %v451_v53 = vpop.f32.mrb[1].mxu1 }
 0x2d2   :  { %366 = vst [vmem:[#allocation10] sm:$0xff] %v363_v52 }
 0x2d3   :  { %612 = shalt.err (!%p609_p8)
}
 0x2d4   :  { %s613_s1 = scalar_lea.hbm %s756_s4, 128 }
 0x2d5   :  { %p614_p9 = scmp.ne.s32.totalorder %s756_s4, %s613_s1  ;;  %p617_p10 = scmp.lt.u32.totalorder %s613_s1, %s756_s4 }
 0x2d7   :  { %p619_p11 = pnand %p617_p10, %p614_p9 }
 0x2d9   :  { %622 = shalt.err (!%p619_p11)
}
 0x2da   :  { %376 = dma.vmem_to_hbm [thread:$0]  %s374_s25, 128, %s756_s4, [#allocation4]  }
 0x2db   :  { %629 = dma.done.wait [#allocation4], 128  }
 0x2dc   :  { %630 = vsyncadd [#allocation4], 4294967168 }
 0x2dd   :  { %380 = vsyncpa [#allocation3], 1 }
 0x2de   :  { %381 = vsyncpa [#allocation6], 1 }
 0x2df   :  { %382 = vsyncpa [#allocation9], 1 }
 0x2e0   :  { %383 = vsyncpa [#allocation4], 1 }

</bundles_post_ra>
